<compile_context>
chip_gen: v7x
topology: tpu7x:2x2x1
jax: 0.10.0
libtpu: 0.0.40
codegen_flags: <defaults>
</compile_context>

<pallas_src>
import numpy as np
import jax
import jax.numpy as jnp
from jax.experimental import pallas as pl
from jax.experimental.pallas import tpu as pltpu


# ----------------------------------------------------------------------------
# Fused kernel: two 2-D matmuls + bias, everything resident in VMEM.
# ----------------------------------------------------------------------------
def _upsample_fused_kernel(x_ref, whwT_ref, wcd_ref, bias_ref, o_ref):
    x = x_ref[0]                                                        # (C*D, H*W)
    # (H, W) -> (Hout, Wout) interpolation (kron of the two 1-D interp mats).
    y = jnp.dot(x, whwT_ref[...], preferred_element_type=jnp.float32)   # (C*D, Ho*Wo)
    # channel mix (1x1x1 conv) fused with D -> Dout interpolation.
    z = jnp.dot(wcd_ref[...], y, preferred_element_type=jnp.float32)    # (Co*Do, Ho*Wo)
    o_ref[0] = (z + bias_ref[...]).astype(o_ref.dtype)


# ----------------------------------------------------------------------------
# Trilinear interpolation weight matrices (PyTorch align_corners=False,
# scale_factor given, recompute_scale_factor=False -> half-pixel centers).
# ----------------------------------------------------------------------------
def linear_interp_matrix(in_size, scale_factor):
    """Returns W of shape (out_size, in_size) with out = W @ in along one axis."""
    out_size = int(np.floor(in_size * scale_factor))
    o = np.arange(out_size, dtype=np.float64)
    src = (o + 0.5) * (1.0 / scale_factor) - 0.5
    src = np.maximum(src, 0.0)
    i0 = np.minimum(np.floor(src).astype(np.int64), in_size - 1)
    i1 = np.minimum(i0 + 1, in_size - 1)
    lam1 = src - i0
    lam0 = 1.0 - lam1
    W = np.zeros((out_size, in_size), dtype=np.float32)
    np.add.at(W, (np.arange(out_size), i0), lam0.astype(np.float32))
    np.add.at(W, (np.arange(out_size), i1), lam1.astype(np.float32))
    return jnp.asarray(W)


# ----------------------------------------------------------------------------
# Parameter construction (interp matrices, optional conv, fused kron weights).
# ----------------------------------------------------------------------------
def init_upsample_params(key, in_channels, out_channels, upsample_factor,
                         in_spatial):
    D, H, W = in_spatial
    fd, fh, fw = upsample_factor
    Wd = linear_interp_matrix(D, fd)
    Wh = linear_interp_matrix(H, fh)
    Ww = linear_interp_matrix(W, fw)
    Dout, Hout, Wout = Wd.shape[0], Wh.shape[0], Ww.shape[0]

    if in_channels != out_channels:
        kw, kb = jax.random.split(key)
        bound = 1.0 / np.sqrt(in_channels)
        conv_w = jax.random.uniform(
            kw, (out_channels, in_channels), jnp.float32, -bound, bound)
        conv_b = jax.random.uniform(
            kb, (out_channels,), jnp.float32, -bound, bound)
    else:
        conv_w = None
        conv_b = None

    wc = conv_w if conv_w is not None else jnp.eye(in_channels, jnp.float32)
    bc = conv_b if conv_b is not None else jnp.zeros((out_channels,), jnp.float32)

    return {
        # raw pieces (kept for the pure-JAX reference in the self-test)
        "Wd": Wd, "Wh": Wh, "Ww": Ww, "conv_w": conv_w, "conv_b": conv_b,
        # fused weights used by the Pallas kernel
        "whwT": jnp.kron(Wh, Ww).T,                 # (H*W, Hout*Wout)
        "wcd": jnp.kron(wc, Wd),                    # (Cout*Dout, Cin*D)
        "bias_rep": jnp.repeat(bc, Dout)[:, None],  # (Cout*Dout, 1)
        # shape metadata
        "out_channels": out_channels, "Dout": Dout, "Hout": Hout, "Wout": Wout,
    }


# ----------------------------------------------------------------------------
# Forward pass.
# ----------------------------------------------------------------------------
def upsample_forward(x, params):
    """x: (N, C, D, H, W) float32 -> (N, C_out, D*fd, H*fh, W*fw)."""
    N, C, D, H, W = x.shape
    whwT, wcd, bias = params["whwT"], params["wcd"], params["bias_rep"]
    Cout, Dout = params["out_channels"], params["Dout"]
    Hout, Wout = params["Hout"], params["Wout"]

    CD, HW = C * D, H * W
    CoDo, HoWo = wcd.shape[0], whwT.shape[1]

    # Free reshape: merge contiguous (C, D) and (H, W) axes.
    x2 = x.reshape(N, CD, HW)

    flops = 2 * N * HoWo * (CD * HW + CoDo * CD)
    bytes_accessed = 4 * (N * CD * HW            # input
                          + HW * HoWo + CoDo * CD + CoDo  # weights + bias
                          + N * CoDo * HoWo)     # output

    out = pl.pallas_call(
        _upsample_fused_kernel,
        out_shape=jax.ShapeDtypeStruct((N, CoDo, HoWo), x.dtype),
        grid_spec=pltpu.PrefetchScalarGridSpec(
            num_scalar_prefetch=0,
            grid=(N,),
            in_specs=[
                pl.BlockSpec((1, CD, HW), lambda n: (n, 0, 0)),   # per-sample volume
                pl.BlockSpec((HW, HoWo), lambda n: (0, 0)),       # kron(Wh, Ww)^T, VMEM-resident
                pl.BlockSpec((CoDo, CD), lambda n: (0, 0)),       # kron(Wc, Wd),  VMEM-resident
                pl.BlockSpec((CoDo, 1), lambda n: (0, 0)),        # bias (repeated over Dout)
            ],
            out_specs=pl.BlockSpec((1, CoDo, HoWo), lambda n: (n, 0, 0)),
        ),
        compiler_params=pltpu.CompilerParams(
            dimension_semantics=("parallel",)),
        cost_estimate=pl.CostEstimate(
            flops=flops, transcendentals=0, bytes_accessed=bytes_accessed),
    )(x2, whwT, wcd, bias)

    # Free reshape: split (Cout*Dout) and (Hout*Wout) back out -> NCDHW.
    return out.reshape(N, Cout, Dout, Hout, Wout)


# ----------------------------------------------------------------------------
if __name__ == "__main__":
    key = jax.random.PRNGKey(0)
    k_x, k_p = jax.random.split(key)

    # Module config: in_channels != out_channels -> 1x1x1 conv is active.
    in_channels, out_channels = 4, 8
    upsample_factor = (2, 2, 2)
    N, D, H, W = 2, 4, 8, 8

    x = jax.random.normal(k_x, (N, in_channels, D, H, W), jnp.float32)
    params = init_upsample_params(
        k_p, in_channels, out_channels, upsample_factor, (D, H, W))

    out = jax.block_until_ready(upsample_forward(x, params))

    # Pure-JAX reference using the same interpolation matrices, original
    # op order (upsample, then conv + bias).
    ref = jnp.einsum("ncdhw,Dd,Hh,Ww->ncDHW",
                     x, params["Wd"], params["Wh"], params["Ww"])
    if params["conv_w"] is not None:
        ref = (jnp.einsum("ncDHW,oc->noDHW", ref, params["conv_w"])
               + params["conv_b"][None, :, None, None, None])

    expected_shape = (N, out_channels,
                      D * upsample_factor[0],
                      H * upsample_factor[1],
                      W * upsample_factor[2])
    assert out.shape == expected_shape, (out.shape, expected_shape)
    assert jnp.allclose(out, ref, atol=1e-4, rtol=1e-4), \
        float(jnp.max(jnp.abs(out - ref)))

    print("KERNEL_OK")
</pallas_src>

<mosaic_0001>
module attributes {stable_mosaic.version = 11 : i64} {
  func.func @_upsample_fused_kernel(%arg0: i32, %arg1: memref<1x16x64xf32, #tpu.memory_space<vmem>>, %arg2: memref<64x256xf32, #tpu.memory_space<vmem>>, %arg3: memref<64x16xf32, #tpu.memory_space<vmem>>, %arg4: memref<64x1xf32, #tpu.memory_space<vmem>>, %arg5: memref<1x64x256xf32, #tpu.memory_space<vmem>>) attributes {dimension_semantics = [#tpu.dimension_semantics<parallel>], iteration_bounds = array<i64: 2>, scalar_prefetch = 0 : i64, scratch_operands = 0 : i64, tpu.core_type = #tpu.core_type<tc>, window_params = [{transform_indices = @transform_0, window_bounds = array<i64: 1, 16, 64>}, {pipeline_mode = #tpu.pipeline_mode<synchronous>, transform_indices = @transform_1, window_bounds = array<i64: 64, 256>}, {pipeline_mode = #tpu.pipeline_mode<synchronous>, transform_indices = @transform_2, window_bounds = array<i64: 64, 16>}, {pipeline_mode = #tpu.pipeline_mode<synchronous>, transform_indices = @transform_3, window_bounds = array<i64: 64, 1>}, {transform_indices = @transform_4, window_bounds = array<i64: 1, 64, 256>}]} {
    %c0 = arith.constant 0 : index
    %c0_0 = arith.constant 0 : index
    %c0_1 = arith.constant 0 : index
    %0 = vector.load %arg1[%c0, %c0_0, %c0_1] : memref<1x16x64xf32, #tpu.memory_space<vmem>>, vector<1x16x64xf32>
    %1 = vector.shape_cast %0 : vector<1x16x64xf32> to vector<16x64xf32>
    %c0_2 = arith.constant 0 : index
    %c0_3 = arith.constant 0 : index
    %2 = vector.load %arg2[%c0_2, %c0_3] : memref<64x256xf32, #tpu.memory_space<vmem>>, vector<64x256xf32>
    %cst = arith.constant dense<0.000000e+00> : vector<16x256xf32>
    %3 = tpu.matmul %1, %2, %cst {dimension_numbers = #tpu.dot_dimension_numbers<[1], [0], [0], [1], [0, 0, 1, 1], [], []>} : vector<16x64xf32>, vector<64x256xf32>, vector<16x256xf32> -> vector<16x256xf32>
    %c0_4 = arith.constant 0 : index
    %c0_5 = arith.constant 0 : index
    %4 = vector.load %arg3[%c0_4, %c0_5] : memref<64x16xf32, #tpu.memory_space<vmem>>, vector<64x16xf32>
    %cst_6 = arith.constant dense<0.000000e+00> : vector<64x256xf32>
    %5 = tpu.matmul %4, %3, %cst_6 {dimension_numbers = #tpu.dot_dimension_numbers<[1], [0], [0], [1], [0, 0, 1, 1], [], []>} : vector<64x16xf32>, vector<16x256xf32>, vector<64x256xf32> -> vector<64x256xf32>
    %c0_7 = arith.constant 0 : index
    %c0_8 = arith.constant 0 : index
    %6 = vector.load %arg4[%c0_7, %c0_8] : memref<64x1xf32, #tpu.memory_space<vmem>>, vector<64x1xf32>
    %7 = vector.broadcast %6 : vector<64x1xf32> to vector<64x256xf32>
    %8 = arith.addf %5, %7 : vector<64x256xf32>
    %c0_9 = arith.constant 0 : index
    %c0_10 = arith.constant 0 : index
    %c0_11 = arith.constant 0 : index
    %9 = vector.load %arg5[%c0_9, %c0_10, %c0_11] : memref<1x64x256xf32, #tpu.memory_space<vmem>>, vector<1x64x256xf32>
    %10 = vector.shape_cast %9 : vector<1x64x256xf32> to vector<64x256xf32>
    %11 = vector.shape_cast %8 : vector<64x256xf32> to vector<1x64x256xf32>
    tpu.vector_store %arg5[%c0_9, %c0_10, %c0_11], %11 {strides = array<i32>} : memref<1x64x256xf32, #tpu.memory_space<vmem>>, vector<1x64x256xf32>,
    return
  }
  func.func @transform_0(%arg0: i32) -> (i32, i32, i32) {
    %c0_i32 = arith.constant 0 : i32
    %c0_i32_0 = arith.constant 0 : i32
    %c0_i32_1 = arith.constant 0 : i32
    return %arg0, %c0_i32, %c0_i32_0 : i32, i32, i32
  }
  func.func @transform_1(%arg0: i32) -> (i32, i32) {
    %c0_i32 = arith.constant 0 : i32
    %c0_i32_0 = arith.constant 0 : i32
    %c0_i32_1 = arith.constant 0 : i32
    return %c0_i32, %c0_i32_0 : i32, i32
  }
  func.func @transform_2(%arg0: i32) -> (i32, i32) {
    %c0_i32 = arith.constant 0 : i32
    %c0_i32_0 = arith.constant 0 : i32
    %c0_i32_1 = arith.constant 0 : i32
    return %c0_i32, %c0_i32_0 : i32, i32
  }
  func.func @transform_3(%arg0: i32) -> (i32, i32) {
    %c0_i32 = arith.constant 0 : i32
    %c0_i32_0 = arith.constant 0 : i32
    %c0_i32_1 = arith.constant 0 : i32
    return %c0_i32, %c0_i32_0 : i32, i32
  }
  func.func @transform_4(%arg0: i32) -> (i32, i32, i32) {
    %c0_i32 = arith.constant 0 : i32
    %c0_i32_0 = arith.constant 0 : i32
    %c0_i32_1 = arith.constant 0 : i32
    return %arg0, %c0_i32, %c0_i32_0 : i32, i32, i32
  }
}

</mosaic_0001>

<bundles_post_ra>
// kernel: tpu_custom_call.1
= control target key start
LH: loop header
LB: loop body
LE: loop exit
PB: predicated region body
PF: predicated region fallthrough
CT: control target
= control target key end

     0   :  { %9 = vsyncpa [#allocation3], 0  ;;  %s1148_s0 = inlined_call_operand.hbm [shape: f32[2,16,64], index: 0, kind: input, shape index: {}]   ;;  %s1149_s1 = inlined_call_operand.vmem [shape: f32[64,256], index: 1, kind: input, shape index: {}]   ;;  %s1150_s2 = inlined_call_operand.vmem [shape: f32[64,16], index: 2, kind: input, shape index: {}]   ;;  %s1151_s3 = inlined_call_operand.vmem [shape: f32[64,1], index: 3, kind: input, shape index: {}]   ;;  %s1152_s4 = inlined_call_operand.hbm [shape: f32[2,64,256], index: 4, kind: output, shape index: {}]  }
   0x1   :  { %11 = vsyncpa [#allocation3 + $0x1], 0 }
   0x2   :  { %12 = vsyncpa [#allocation4], 0 }
   0x3   :  { %14 = vsyncpa [#allocation4 + $0x1], 0  ;;  %s848_s15 = smov 0   ;;  %s850_s16 = smov 0  }
   0x4   :  { %s852_s17 = smov 0   ;;  %s854_s18 = smov 0  }
   0x5 LB: > { %s869_s19 = sadd.s32 4294967295, %s813_s18   ;;  %s615_s20 = sadd.s32 4294967294, %s813_s18   ;;  %s813_s18 = sphi %s854_s18, %s1165_s18   ;;  %s809_s17 = sphi %s852_s17, %s1164_s17   ;;  %s805_s16 = sphi %s850_s16, %s1163_s16   ;;  %s801_s15 = sphi %s848_s15, %s1162_s15  }
   0x6   : > { %s873_s21 = sadd.s32 1, %s813_s18   ;;  %s27_s22 = sadd.s32 1, %s809_s17 }
   0x7   : > { %s24_s23 = ssub.s32 %s813_s18, %s873_s21  ;;  %p34_p0 = scmp.ne.s32.totalorder %s809_s17, %s805_s16 }
   0x8   : > { %p25_p1 = scmp.eq.s32.totalorder %s24_s23, 0  ;;  %p35_p2 = scmp.eq.s32.totalorder %s813_s18, 0 }
   0x9   : > { %p40_p3 = scmp.ne.s32.totalorder %s805_s16, %s801_s15  ;;  %p41_p4 = scmp.eq.s32.totalorder %s869_s19, 0 }
   0xa   : > { %s885_s24 = scalar_select %p25_p1, %s809_s17, %s27_s22  }
   0xb   : > { %p887_p5 = por %p35_p2, %p34_p0  ;;  %p891_p6 = por %p41_p4, %p40_p3 }
   0xc   : > { %p127_p7 = scmp.eq.s32.totalorder %s869_s19, 1  ;;  %p133_p8 = scmp.eq.s32.totalorder %s615_s20, 1 }
   0xd   : > { %p675_p10 = scmp.lt.s32.totalorder %s813_s18, 2  ;;  %s162_s29 = sand.u32 1, %s809_s17  }
   0xe   : > { %p898_p11 = por %p127_p7, %p34_p0  ;;  %p902_p12 = por %p133_p8, %p40_p3 }
   0xf   : > { %s639_s30 = sshll.u32 %s813_s18, 8  ;;  %s618_s5 = sshll.u32 %s162_s29, 4 }
  0x10   : > { %s1156_s27 = scalar_select %p898_p11, 1, 0 }
  0x11   : > { %s1157_s28 = scalar_select %p902_p12, 1, 0 }
  0x12   : > { %s911_s8 = scalar_lea.hbm %s1148_s0, %s639_s30  ;;  %s166_s9 = scalar_lea.vmem [#allocation2], %s618_s5 }
  0x13   : > { %s173_s10 = sshll.u32 %s166_s9, 4  ;;  %p915_p13 = pnand %p675_p10, %p887_p5  ;;  %s919_s10 = int_to_ptr.vmem [resolvable:$true] %s173_s10 }
  0x14   : > { %s921_s12 = scalar_lea.sflag [#allocation3], %s162_s29  ;;  %s717_s13 = scalar_lea.hbm %s911_s8, 256 }
  0x15   : > { %p718_p0 = scmp.ne.s32.totalorder %s911_s8, %s717_s13  ;;  %p719_p1 = pneg %p915_p13 }
  0x16   : > { %s722_s22 = scalar_lea.hbm %s1148_s0, 512  ;;  %p723_p4 = scmp.lt.u32.totalorder %s911_s8, %s1148_s0 }
  0x17   : > { %p720_p2 = pnand %p719_p1, %p718_p0  ;;  %p724_p5 = scmp.lt.u32.totalorder %s722_s22, %s717_s13 }
  0x18   : > { %p726_p8 = scmp.lt.u32.totalorder %s717_s13, %s911_s8 }
  0x19   : > { %p721_p3 = pneg %p720_p2  ;;  %p725_p7 = por %p724_p5, %p723_p4 }
  0x1b   : > { %p727_p10 = por %p726_p8, %p725_p7 }
  0x1d   : > { %p728_p9 = pnand %p727_p10, %p721_p3 }
  0x1f   : > { %731 = shalt.err (!%p728_p9)
}
  0x20   : > { %s732_s29 = scalar_lea.vmem %s919_s10, 256  ;;  %s815_s30 = smov [#allocation2]  }
  0x21   : > { %p733_p0 = scmp.ne.s32.totalorder %s919_s10, %s732_s29  ;;  %s737_s5 = sshll.u32 %s815_s30, 4  ;;  %s738_s5 = int_to_ptr.vmem [resolvable:$false] %s737_s5 }
  0x22   : > { %s739_s6 = scalar_lea.vmem %s738_s5, 512  ;;  %p740_p11 = scmp.lt.s32.totalorder %s919_s10, %s738_s5 }
  0x23   : > { %p735_p2 = pnand %p733_p0, %p719_p1  ;;  %p741_p4 = scmp.lt.s32.totalorder %s739_s6, %s732_s29 }
  0x25   : > { %p736_p12 = pneg %p735_p2  ;;  %p742_p5 = por %p741_p4, %p740_p11 }
  0x27   : > { %p743_p7 = pnand %p742_p5, %p736_p12 }
  0x29   : > { %746 = shalt.err (!%p743_p7)
}
  0x2a   : > { %s816_s7 = smov 128   ;;  %s817_s9 = smov 8  }
  0x2b   : > { %670 = dma.hbm_to_vmem [thread:$0]  (!%p915_p13), %s911_s8, 256, %s919_s10, %s921_s12, %s816_s7, %s816_s7, %s817_s9  }
  0x2c   : > { %p621_p9 = scmp.ge.s32.totalorder %s813_s18, 1  ;;  %p181_p1 = scmp.lt.s32.totalorder %s813_s18, 3 }
  0x2e   : > { %p182_p3 = pnand %p621_p9, %p181_p1 }
  0x2f   : > { %s952_s13 = sand.u32 (!%p182_p3), 1, %s805_s16  }
  0x30   : > { %185 = sbr.rel (%p182_p3) target bundleno = 552 (0x228), region = 36  ;;  %s622_s14 = sshll.u32 (!%p182_p3), %s952_s13, 4 }
  0x31   : > { %s188_s20 = scalar_lea.sflag (!%p182_p3), [#allocation3], %s952_s13  ;;  %s956_s22 = scalar_lea.vmem (!%p182_p3), [#allocation2], %s622_s14 }
  0x37   : > { %792 = dma.done.wait (%p891_p6), %s188_s20, 256  }
  0x38   : > { %794 = vsyncadd (%p891_p6), %s188_s20, 4294967040  ;;  %v818_v0 = vmov 0.0   ;;  %v219_v1 = vld [vmem:[%s1149_s1 + $0x8] sm:$0xff]  ;;  %v221_v2 = vld [vmem:[%s1149_s1 + $0x18] sm:$0xff]  ;;  %vm234_vm0 = vcmask 523264   ;;  %v819_v29 = vmov 0  }
  0x39   : > { %305 = vmatprep.mubr.f32.mxu0 %v818_v0  ;;  %469 = vmatprep.mubr.f32.mxu1 %v818_v0  ;;  %v218_v3 = vld [vmem:[%s1149_s1] sm:$0xff]  ;;  %v641_v4 = vpack.c.bf16 %v221_v2, %v219_v1  ;;  %v220_v5 = vld [vmem:[%s1149_s1 + $0x10] sm:$0xff]  ;;  %v223_v6 = vld [vmem:[%s1149_s1 + $0x28] sm:$0xff]  ;;  %vm374_vm1 = vcmask 130048   ;;  %s623_s11 = sshll.u32 %s952_s13, 7  ;;  %s640_s23 = sshll.u32 %s869_s19, 11 }
  0x3a   : > { %v225_v7 = vld [vmem:[%s1149_s1 + $0x38] sm:$0xff]  ;;  %v643_v8 = vpack.c.bf16 %v220_v5, %v218_v3  ;;  %v222_v10 = vld [vmem:[%s1149_s1 + $0x20] sm:$0xff]  ;;  %v224_v11 = vld [vmem:[%s1149_s1 + $0x30] sm:$0xff]  ;;  %715 = vset.pattern.permute.xlu0 %v819_v29  ;;  %716 = vset.pattern.permute.xlu1 %v819_v29  ;;  %s1079_s12 = scalar_lea.vmem [#allocation5], %s623_s11  ;;  %s529_s19 = scalar_lea.sflag [#allocation4], %s952_s13 }
  0x3b   : > { %v645_v9 = vpack.c.bf16 %v225_v7, %v223_v6  ;;  %v227_v12 = vld [vmem:[%s1149_s1 + $0x48] sm:$0xff]  ;;  %642 = vmatprep.subr.bf16.mxu0 %v641_v4  ;;  %v229_v13 = vld [vmem:[%s1149_s1 + $0x58] sm:$0xff]  ;;  %v647_v14 = vpack.c.bf16 %v224_v11, %v222_v10  ;;  %v226_v16 = vld [vmem:[%s1149_s1 + $0x40] sm:$0xff]  ;;  %s542_s25 = sshll.u32 %s1079_s12, 4  ;;  %p1159_p11 = scmp.ne.s32.totalorder %s1156_s27, 0  ;;  %s1102_s25 = int_to_ptr.vmem [resolvable:$true] %s542_s25 }
  0x3c   : > { %644 = vmatpush1.bf16.msra.mxu0 %v643_v8  ;;  %v649_v15 = vpack.c.bf16 %v229_v13, %v227_v12  ;;  %v228_v17 = vld [vmem:[%s1149_s1 + $0x50] sm:$0xff]  ;;  %v231_v18 = vld [vmem:[%s1149_s1 + $0x68] sm:$0xff]  ;;  %v233_v19 = vld [vmem:[%s1149_s1 + $0x78] sm:$0xff]  ;;  %s747_s30 = scalar_lea.vmem %s1102_s25, 2048  ;;  %s820_s5 = smov [#allocation5]  }
  0x3d   : > { %646 = vmatprep.subr.bf16.mxu0 %v645_v9  ;;  %v651_v20 = vpack.c.bf16 %v228_v17, %v226_v16  ;;  %v653_v21 = vpack.c.bf16 %v233_v19, %v231_v18  ;;  %v230_v22 = vld [vmem:[%s1149_s1 + $0x60] sm:$0xff]  ;;  %v232_v23 = vld [vmem:[%s1149_s1 + $0x70] sm:$0xff]  ;;  %v217_v26 = vld [vmem:[%s956_s22 + $0x8] sm:$0xff]  ;;  %p748_p6 = scmp.ne.s32.totalorder %s1102_s25, %s747_s30  ;;  %s751_s6 = sshll.u32 %s820_s5, 4  ;;  %s752_s6 = int_to_ptr.vmem [resolvable:$false] %s751_s6 }
  0x3e   : > { %v655_v24 = vpack.c.bf16 %v232_v23, %v230_v22  ;;  %v216_v25 = vld [vmem:[%s956_s22] sm:$0xff]  ;;  %v327_v30 = vld [vmem:[%s1151_s3 + $0x8] sm:$0xff]  ;;  %v329_v31 = vld [vmem:[%s1151_s3 + $0x18] sm:$0xff]  ;;  %s1100_s22 = scalar_lea.hbm %s1152_s4, %s640_s23  ;;  %s753_s7 = scalar_lea.vmem %s752_s6, 4096 }
  0x3f   : > { %v326_v27 = vld [vmem:[%s1151_s3] sm:$0xff]  ;;  %v328_v28 = vld [vmem:[%s1151_s3 + $0x10] sm:$0xff]  ;;  %v331_v32 = vld [vmem:[%s1151_s3 + $0x28] sm:$0xff]  ;;  %p749_p12 = pnand %p748_p6, %p1159_p11  ;;  %p754_p8 = scmp.lt.s32.totalorder %s1102_s25, %s752_s6 }
  0x40   : > { %648 = vmatpush1.bf16.msra.mxu0 %v647_v14  ;;  %336 = vperm.xlu0 %715, %v326_v27   ;;  %v330_v33 = vld [vmem:[%s1151_s3 + $0x20] sm:$0xff]  ;;  %v333_v34 = vld [vmem:[%s1151_s3 + $0x38] sm:$0xff]  ;;  %v332_v35 = vld [vmem:[%s1151_s3 + $0x30] sm:$0xff]  ;;  %p755_p10 = scmp.lt.s32.totalorder %s753_s7, %s747_s30 }
  0x41   : > { %650 = vmatprep.subr.bf16.mxu0 %v649_v15  ;;  %346 = vperm.xlu1 %716, %v328_v28   ;;  %v319_v42 = vld [vmem:[%s1150_s2 + $0x8] sm:$0xff]  ;;  %v318_v43 = vld [vmem:[%s1150_s2] sm:$0xff]  ;;  %v320_v44 = vld [vmem:[%s1150_s2 + $0x10] sm:$0xff]  ;;  %p750_p13 = pneg %p749_p12 }
  0x42   : > { %v321_v45 = vld [vmem:[%s1150_s2 + $0x18] sm:$0xff]  ;;  %v322_v46 = vld [vmem:[%s1150_s2 + $0x20] sm:$0xff]  ;;  %v323_v47 = vld [vmem:[%s1150_s2 + $0x28] sm:$0xff]  ;;  %p756_p0 = por %p755_p10, %p754_p8 }
  0x43   : > { %v324_v48 = vld [vmem:[%s1150_s2 + $0x30] sm:$0xff]  ;;  %v325_v49 = vld [vmem:[%s1150_s2 + $0x38] sm:$0xff] }
  0x44   : > { %652 = vmatpush1.bf16.msra.mxu0 %v651_v20  ;;  %341 = vperm.xlu0 %715, %v327_v30   ;;  %p757_p2 = pnand %p756_p0, %p750_p13 }
  0x45   : > { %654 = vmatprep.subr.bf16.mxu0 %v653_v21  ;;  %351 = vperm.xlu1 %716, %v329_v31  }
  0x48   : > { %656 = vmatpush1.bf16.msra.mxu0 %v655_v24  ;;  %356 = vperm.xlu0 %715, %v330_v33  }
  0x49   : > { %361 = vperm.xlu1 %716, %v331_v32  }
  0x4b   : > { %624 = vmatmul.mubr.msk.f32.vlgmr.msra.gmra.mrb[0].mxu0 %vm234_vm0, %v216_v25 }
  0x4c   : > { %311 = vmatprep.mubr.f32.mxu0 %v818_v0  ;;  %366 = vperm.xlu0 %715, %v332_v35  }
  0x4d   : > { %371 = vperm.xlu1 %716, %v333_v34  }
  0x4f   : > { %625 = vmatmul.mubr.msk.f32.gmra.mrb[2].mxu0 %vm234_vm0, %v217_v26 }
  0x50   : > { %463 = vmatprep.mubr.f32.mxu0 %v818_v0 }
  0xbf   : > { %v337_v50 = vpop.permute.xlu0 %336 }
  0xc0   : > { %v347_v58 = vpop.permute.xlu1 %346 }
  0xc3   : > { %v342_v51 = vpop.permute.xlu0 %341 }
  0xc4   : > { %v352_v1 = vpop.permute.xlu1 %351 }
  0xc7   : > { %v357_v6 = vpop.permute.xlu0 %356 }
  0xc8   : > { %v362_v11 = vpop.permute.xlu1 %361 }
  0xcb   : > { %v367_v16 = vpop.permute.xlu0 %366 }
  0xcc   : > { %v372_v21 = vpop.permute.xlu1 %371 }
 0x11e   : > { %v307_v36 = vpop.f32.mrb[0].mxu0 }
 0x11f   : > { %v309_v37 = vpop.f32.mrb[1].mxu0 }
 0x122   : > { %v313_v38 = vpop.f32.mrb[2].mxu0 }
 0x123   : > { %v659_v39 = vpack.c.bf16 %v313_v38, %v307_v36  ;;  %v315_v40 = vpop.f32.mrb[3].mxu0 }
 0x124   : > { %v657_v41 = vpack.c.bf16 %v315_v40, %v309_v37 }
 0x126   : > { %658 = vmatprep.subr.bf16.mxu0 %v657_v41  ;;  %661 = vmatprep.subr.bf16.mxu1 %v657_v41 }
 0x127   : > { %660 = vmatpush1.bf16.msra.mxu0 %v659_v39  ;;  %662 = vmatpush1.bf16.msra.mxu1 %v659_v39 }
 0x12a   : > { %627 = vmatmul.mubr.msk.f32.vlgmr.msra.gmra.mrb[0].mxu1 %vm374_vm1, %v319_v42  ;;  %626 = vmatmul.mubr.msk.f32.vlgmr.msra.gmra.mrb[4].mxu0 %vm374_vm1, %v318_v43 }
 0x12b   : > { %475 = vmatprep.mubr.f32.mxu1 %v818_v0 }
 0x12e   : > { %628 = vmatmul.mubr.msk.f32.gmra.mrb[2].mxu1 %vm374_vm1, %v320_v44 }
 0x12f   : > { %481 = vmatprep.mubr.f32.mxu1 %v818_v0 }
 0x132   : > { %629 = vmatmul.mubr.msk.f32.gmra.mrb[4].mxu1 %vm374_vm1, %v321_v45 }
 0x133   : > { %487 = vmatprep.mubr.f32.mxu1 %v818_v0 }
 0x136   : > { %630 = vmatmul.mubr.msk.f32.gmra.mrb[6].mxu1 %vm374_vm1, %v322_v46 }
 0x137   : > { %493 = vmatprep.mubr.f32.mxu1 %v818_v0 }
 0x13a   : > { %631 = vmatmul.mubr.msk.f32.gmra.mrb[8].mxu1 %vm374_vm1, %v323_v47 }
 0x13b   : > { %499 = vmatprep.mubr.f32.mxu1 %v818_v0 }
 0x13e   : > { %632 = vmatmul.mubr.msk.f32.gmra.mrb[10].mxu1 %vm374_vm1, %v324_v48 }
 0x13f   : > { %505 = vmatprep.mubr.f32.mxu1 %v818_v0 }
 0x142   : > { %633 = vmatmul.mubr.msk.f32.gmra.mrb[12].mxu1 %vm374_vm1, %v325_v49 }
 0x1fd   : > { %v471_v52 = vpop.f32.mrb[0].mxu1  ;;  %v465_v53 = vpop.f32.mrb[4].mxu0 }
 0x1fe   : > { %v472_v54 = vadd.f32 %v471_v52, %v342_v51  ;;  %v473_v55 = vpop.f32.mrb[1].mxu1  ;;  %v466_v56 = vadd.f32 %v465_v53, %v337_v50  ;;  %v467_v57 = vpop.f32.mrb[5].mxu0 }
 0x1ff   : > { %v474_v59 = vadd.f32 %v473_v55, %v342_v51  ;;  %v468_v60 = vadd.f32 %v467_v57, %v337_v50 }
 0x200   : > { %514 = vst [vmem:[%s1079_s12 + $0x10] sm:$0xff] %v472_v54  ;;  %512 = vst [vmem:[%s1079_s12] sm:$0xff] %v466_v56 }
 0x201   : > { %515 = vst [vmem:[%s1079_s12 + $0x18] sm:$0xff] %v474_v59  ;;  %v477_v61 = vpop.f32.mrb[2].mxu1  ;;  %513 = vst [vmem:[%s1079_s12 + $0x8] sm:$0xff] %v468_v60 }
 0x202   : > { %v478_v62 = vadd.f32 %v477_v61, %v347_v58  ;;  %v479_v63 = vpop.f32.mrb[3].mxu1 }
 0x203   : > { %v480_v0 = vadd.f32 %v479_v63, %v347_v58 }
 0x204   : > { %516 = vst [vmem:[%s1079_s12 + $0x20] sm:$0xff] %v478_v62 }
 0x205   : > { %517 = vst [vmem:[%s1079_s12 + $0x28] sm:$0xff] %v480_v0  ;;  %v483_v2 = vpop.f32.mrb[4].mxu1 }
 0x206   : > { %v484_v3 = vadd.f32 %v483_v2, %v352_v1  ;;  %v485_v4 = vpop.f32.mrb[5].mxu1 }
 0x207   : > { %v486_v5 = vadd.f32 %v485_v4, %v352_v1 }
 0x208   : > { %518 = vst [vmem:[%s1079_s12 + $0x30] sm:$0xff] %v484_v3 }
 0x209   : > { %519 = vst [vmem:[%s1079_s12 + $0x38] sm:$0xff] %v486_v5  ;;  %v489_v7 = vpop.f32.mrb[6].mxu1 }
 0x20a   : > { %v490_v8 = vadd.f32 %v489_v7, %v357_v6  ;;  %v491_v9 = vpop.f32.mrb[7].mxu1 }
 0x20b   : > { %v492_v10 = vadd.f32 %v491_v9, %v357_v6 }
 0x20c   : > { %520 = vst [vmem:[%s1079_s12 + $0x40] sm:$0xff] %v490_v8 }
 0x20d   : > { %521 = vst [vmem:[%s1079_s12 + $0x48] sm:$0xff] %v492_v10  ;;  %v495_v12 = vpop.f32.mrb[8].mxu1 }
 0x20e   : > { %v496_v13 = vadd.f32 %v495_v12, %v362_v11  ;;  %v497_v14 = vpop.f32.mrb[9].mxu1 }
 0x20f   : > { %v498_v15 = vadd.f32 %v497_v14, %v362_v11 }
 0x210   : > { %522 = vst [vmem:[%s1079_s12 + $0x50] sm:$0xff] %v496_v13 }
 0x211   : > { %523 = vst [vmem:[%s1079_s12 + $0x58] sm:$0xff] %v498_v15  ;;  %v501_v17 = vpop.f32.mrb[10].mxu1 }
 0x212   : > { %v502_v18 = vadd.f32 %v501_v17, %v367_v16  ;;  %v503_v19 = vpop.f32.mrb[11].mxu1 }
 0x213   : > { %v504_v20 = vadd.f32 %v503_v19, %v367_v16 }
 0x214   : > { %524 = vst [vmem:[%s1079_s12 + $0x60] sm:$0xff] %v502_v18 }
 0x215   : > { %525 = vst [vmem:[%s1079_s12 + $0x68] sm:$0xff] %v504_v20  ;;  %v507_v22 = vpop.f32.mrb[12].mxu1 }
 0x216   : > { %v508_v23 = vadd.f32 %v507_v22, %v372_v21  ;;  %v509_v24 = vpop.f32.mrb[13].mxu1 }
 0x217   : > { %v510_v25 = vadd.f32 %v509_v24, %v372_v21 }
 0x218   : > { %526 = vst [vmem:[%s1079_s12 + $0x70] sm:$0xff] %v508_v23 }
 0x219   : > { %527 = vst [vmem:[%s1079_s12 + $0x78] sm:$0xff] %v510_v25 }
 0x21a   : > { %760 = shalt.err (!%p757_p2)
}
 0x21b   : > { %s761_s9 = scalar_lea.hbm %s1100_s22, 2048  ;;  %s765_s8 = scalar_lea.hbm %s1152_s4, 4096 }
 0x21c   : > { %p762_p4 = scmp.ne.s32.totalorder %s1100_s22, %s761_s9  ;;  %p766_p9 = scmp.lt.u32.totalorder %s1100_s22, %s1152_s4 }
 0x21d   : > { %p767_p1 = scmp.lt.u32.totalorder %s765_s8, %s761_s9  ;;  %p769_p6 = scmp.lt.u32.totalorder %s761_s9, %s1100_s22 }
 0x21e   : > { %p763_p5 = pnand %p762_p4, %p1159_p11 }
 0x21f   : > { %p768_p3 = por %p767_p1, %p766_p9 }
 0x220   : > { %p764_p7 = pneg %p763_p5 }
 0x221   : > { %p770_p12 = por %p769_p6, %p768_p3 }
 0x223   : > { %p771_p13 = pnand %p770_p12, %p764_p7 }
 0x225   : > { %774 = shalt.err (!%p771_p13)
}
 0x226   : > { %s821_s12 = smov 256   ;;  %s822_s23 = smov 16  }
 0x227   : > { %665 = dma.vmem_to_hbm [thread:$0]  (%p1159_p11), %s1102_s25, 2048, %s1100_s22, %s529_s19, %s821_s12, %s821_s12, %s822_s23  }
 0x228 PF: > { %s557_s26 = sand.u32 1, %s801_s15   ;;  %p1160_p8 = scmp.ne.s32.totalorder %s1157_s28, 0 }
 0x229   : > { %p1161_p10 = scmp.ge.s32.totalorder %s813_s18, 2  ;;  %s558_s29 = scalar_lea.sflag [#allocation4], %s557_s26 }
 0x22b   : > { %p672_p0 = pnand %p1161_p10, %p1160_p8 }
 0x22d   : > { %796 = dma.done.wait (!%p672_p0), %s558_s29, 2048  }
 0x22e   : > { %798 = vsyncadd (!%p672_p0), %s558_s29, 4294965248  ;;  %p17_p2 = scmp.ge.s32.totalorder %s873_s21, 4   ;;  %s1162_s15 = smov %s805_s16 }
 0x22f   : > { %s1163_s16 = smov %s809_s17  ;;  %s1164_s17 = smov %s885_s24 }
 0x230   : > { %s1165_s18 = smov %s873_s21  ;;  %19 = sbr.rel (!%p17_p2) target bundleno = 5 (0x5), region = 81 }
 0x237   :  { %563 = vsyncpa [#allocation3], 1 }
 0x238   :  { %565 = vsyncpa [#allocation3 + $0x1], 1 }
 0x239   :  { %566 = vsyncpa [#allocation4], 1 }
 0x23a   :  { %568 = vsyncpa [#allocation4 + $0x1], 1 }

</bundles_post_ra>
